<compile_context>
chip_gen: v7x
topology: tpu7x:2x2x1
jax: 0.10.0
libtpu: 0.0.40
codegen_flags: <defaults>
</compile_context>

<pallas_src>
import jax
import jax.numpy as jnp
from jax.experimental import pallas as pl
from jax.experimental.pallas import tpu as pltpu


_TILE_CANDIDATES = (8192, 4096, 2048, 1024, 512, 256, 128)
_DEFAULT_MAX_BLOCK_BYTES = 4 << 20       # per streamed weight block
_VMEM_LIMIT = 32 * 1024 * 1024           # explicit: v5e default is only 16 MiB


def _round_up(n, m):
    return -(-n // m) * m


def _pad_items(n, bytes_per_col, max_block_bytes):
    """Padded item dimension so a byte-capped lane tile divides it exactly."""
    cands = [t for t in _TILE_CANDIDATES if t * bytes_per_col <= max_block_bytes]
    if not cands:
        cands = [128]
    for t in cands:                       # exact divisor -> no padding
        if n % t == 0:
            return n
    for t in cands:                       # modest padding (<= 12.5%) for big tiles
        if t <= n and (_round_up(n, t) - n) * 8 <= n:
            return _round_up(n, t)
    return _round_up(n, 128)


def _tile_for(padded_n, bytes_per_col, max_block_bytes):
    """Largest byte-capped lane tile dividing the (already padded) item dim."""
    for t in _TILE_CANDIDATES:
        if t * bytes_per_col <= max_block_bytes and padded_n % t == 0:
            return t
    return min(padded_n, 128)


# ---------------------------------------------------------------------------
# Kernel 1: partial[c] = sum_k dropout(x)[:, k-blocks of core c] @ W1[k-blocks]
#   grid = (ncores "parallel", nk_per_core "arbitrary"); the output block is the
#   resident f32 accumulator (init via pl.when at k == 0).
# ---------------------------------------------------------------------------
def _hidden_kernel(x_ref, mask_ref, w1_ref, part_ref):
    @pl.when(pl.program_id(1) == 0)
    def _():
        part_ref[...] = jnp.zeros_like(part_ref)

    # Dropout: int8 {0,1} keep-mask; the 1/(1-p) scale is applied once in the
    # epilogue (linear in x), so the widest in-kernel elementwise path is one mul.
    xb = x_ref[...] * mask_ref[...].astype(jnp.bfloat16)            # (B, tk) bf16
    part_ref[...] += jnp.dot(xb, w1_ref[...],
                             preferred_element_type=jnp.float32)     # (B, emb) f32


# ---------------------------------------------------------------------------
# Kernel 2: out = h @ W2 + b2, lane-dense output tiles over item_num ("parallel")
# ---------------------------------------------------------------------------
def _out_kernel(h_ref, w2_ref, b2_ref, out_ref):
    out = jnp.dot(h_ref[...], w2_ref[...], preferred_element_type=jnp.float32)
    out_ref[...] = (out + b2_ref[...]).astype(out_ref.dtype)


# ---------------------------------------------------------------------------
# One-time parameter prep (hoisted out of the per-call path).
# ---------------------------------------------------------------------------
def prepare_params(params, max_block_bytes=_DEFAULT_MAX_BLOCK_BYTES):
    h_item_w = jnp.asarray(params["h_item_w"])     # (emb, item_num) PyTorch Linear
    out_w = jnp.asarray(params["out_w"])           # (item_num, emb)
    emb, item_num = h_item_w.shape

    item_pad = _pad_items(item_num, emb * 2, max_block_bytes)
    pad = item_pad - item_num

    w1 = h_item_w.T.astype(jnp.bfloat16)           # (item_num, emb)
    w2 = out_w.T.astype(jnp.bfloat16)              # (emb, item_num)
    b2 = jnp.asarray(params["out_b"]).astype(jnp.float32)
    if pad:
        w1 = jnp.pad(w1, ((0, pad), (0, 0)))       # zero rows: contribute 0 to acc
        w2 = jnp.pad(w2, ((0, 0), (0, pad)))       # zero cols: padded outputs = 0
        b2 = jnp.pad(b2, ((0, pad),))

    return {
        "h_user_w": jnp.asarray(params["h_user_w"]).astype(jnp.float32),
        "w1": w1,                                   # (item_pad, emb) bf16
        "w2": w2,                                   # (emb, item_pad) bf16
        "b1": jnp.asarray(params["h_item_b"]).reshape(1, -1).astype(jnp.float32),
        "b2": b2.reshape(1, -1),                    # (1, item_pad) f32
    }


def cdae_encoder_forward(x_items, x_users, prep, corruption_ratio, *,
                         dropout_key=None, training=True,
                         out_dtype=jnp.float32,
                         max_block_bytes=_DEFAULT_MAX_BLOCK_BYTES):
    """Embedding gather + dropout mask in JAX glue, both matmuls in Pallas."""
    w1, w2, b1, b2 = prep["w1"], prep["w2"], prep["b1"], prep["b2"]
    B, item_num = x_items.shape
    item_pad, emb = w1.shape

    # Embedding lookup (glue, outside the kernel).
    h_u = jnp.take(prep["h_user_w"], x_users, axis=0)                # (B, emb) f32

    # Dropout keep-mask as int8 (half the bf16 stream); drawn with jax.random so
    # it is reproducible by the reference.  Scale 1/(1-p) applied in the epilogue.
    # TODO(synk): generate the keep-mask in-kernel with pltpu.prng_seed /
    #             prng_random_bits to remove this HBM stream entirely.
    p = float(corruption_ratio)
    if training and p > 0.0:
        if dropout_key is None:
            raise ValueError("dropout_key is required when training with "
                             "corruption_ratio > 0")
        keep = jax.random.bernoulli(dropout_key, 1.0 - p, (B, item_num))
        mask = keep.astype(jnp.int8)
        keep_scale = 1.0 / (1.0 - p)
    else:
        mask = jnp.ones((B, item_num), jnp.int8)
        keep_scale = 1.0

    x_bf = x_items.astype(jnp.bfloat16)                              # binary -> exact
    pad = item_pad - item_num
    if pad:
        x_bf = jnp.pad(x_bf, ((0, 0), (0, pad)))
        mask = jnp.pad(mask, ((0, 0), (0, pad)))

    tile = _tile_for(item_pad, emb * 2, max_block_bytes)
    nk = item_pad // tile
    ncores = 2 if (nk >= 2 and nk % 2 == 0) else 1   # v7x megacore reduction split
    nk_per = nk // ncores

    # ---- Kernel 1: per-core partial sums of dropout(x) @ W1 -----------------
    w1_kwargs = {"pipeline_mode": pl.Buffered(3)} if nk_per >= 3 else {}
    cost1 = pl.CostEstimate(
        flops=2 * B * item_pad * emb,
        transcendentals=0,
        bytes_accessed=item_pad * emb * 2 + B * item_pad * 3 + ncores * B * emb * 4)

    partials = pl.pallas_call(
        _hidden_kernel,
        out_shape=jax.ShapeDtypeStruct((ncores, B, emb), jnp.float32),
        grid=(ncores, nk_per),
        in_specs=[
            pl.BlockSpec((B, tile), lambda c, k: (0, c * nk_per + k)),   # x block
            pl.BlockSpec((B, tile), lambda c, k: (0, c * nk_per + k)),   # mask block
            pl.BlockSpec((tile, emb), lambda c, k: (c * nk_per + k, 0),  # W1 stream
                         **w1_kwargs),
        ],
        out_specs=pl.BlockSpec((None, B, emb), lambda c, k: (c, 0, 0)),  # resident acc
        compiler_params=pltpu.CompilerParams(
            dimension_semantics=("parallel", "arbitrary"),
            vmem_limit_bytes=_VMEM_LIMIT),
        cost_estimate=cost1,
    )(x_bf, mask, w1)

    # Tiny epilogue: combine core partials, bias, user embedding, relu -> bf16 h.
    acc = partials.sum(axis=0)                                        # (B, emb) f32
    h = jnp.maximum(keep_scale * acc + b1 + h_u, 0.0).astype(jnp.bfloat16)

    # ---- Kernel 2: output layer, lane-dense item_num tiles ------------------
    nj = item_pad // tile
    w2_kwargs = {"pipeline_mode": pl.Buffered(3)} if nj >= 3 else {}
    cost2 = pl.CostEstimate(
        flops=2 * B * item_pad * emb,
        transcendentals=0,
        bytes_accessed=item_pad * emb * 2 + B * emb * 2 + item_pad * 4
                       + B * item_pad * jnp.dtype(out_dtype).itemsize)

    out = pl.pallas_call(
        _out_kernel,
        out_shape=jax.ShapeDtypeStruct((B, item_pad), out_dtype),
        grid=(nj,),
        in_specs=[
            pl.BlockSpec((B, emb), lambda j: (0, 0)),                 # h (resident)
            pl.BlockSpec((emb, tile), lambda j: (0, j), **w2_kwargs), # W2 stream
            pl.BlockSpec((1, tile), lambda j: (0, j), **w2_kwargs),   # b2 block
        ],
        out_specs=pl.BlockSpec((B, tile), lambda j: (0, j)),          # lane-dense out
        compiler_params=pltpu.CompilerParams(
            dimension_semantics=("parallel",),                        # v7x: 2 TCs
            vmem_limit_bytes=_VMEM_LIMIT),
        cost_estimate=cost2,
    )(h, w2, b2)

    if pad:
        out = out[:, :item_num]
    # TODO(synk): self.o_act (sigmoid) is defined in the module but never applied
    # in forward(); we match the PyTorch forward and do not apply it.
    return out


def _xavier_normal(key, shape):
    fan_out, fan_in = shape
    std = (2.0 / float(fan_in + fan_out)) ** 0.5
    return std * jax.random.normal(key, shape, dtype=jnp.float32)


def init_params(key, user_num, item_num, emb_size):
    k1, k2, k3 = jax.random.split(key, 3)
    return {
        "h_user_w": _xavier_normal(k1, (user_num, emb_size)),     # nn.Embedding
        "h_item_w": _xavier_normal(k2, (emb_size, item_num)),     # nn.Linear weight
        "h_item_b": jnp.zeros((emb_size,), jnp.float32),
        "out_w": _xavier_normal(k3, (item_num, emb_size)),        # nn.Linear weight
        "out_b": jnp.zeros((item_num,), jnp.float32),
    }


if __name__ == "__main__":
    B = 8
    user_num = 16
    item_num = 1024
    emb_size = 128
    corruption_ratio = 0.2

    key = jax.random.PRNGKey(0)
    kp, kx, ku, kd = jax.random.split(key, 4)

    params = init_params(kp, user_num, item_num, emb_size)
    x_items = (jax.random.uniform(kx, (B, item_num)) < 0.1).astype(jnp.float32)
    x_users = jax.random.randint(ku, (B,), 0, user_num, dtype=jnp.int32)

    # One-time weight prep (hoisted transpose/cast/pad), then the per-call forward.
    prep = prepare_params(params)
    out = cdae_encoder_forward(x_items, x_users, prep, corruption_ratio,
                               dropout_key=kd, training=True)
    jax.block_until_ready(out)
    assert out.shape == (B, item_num) and out.dtype == jnp.float32

    # Pure-JAX f32 reference with the identical dropout mask (bf16 weights in the
    # kernel -> compare with a loose relative tolerance).
    keep = jax.random.bernoulli(kd, 1.0 - corruption_ratio, x_items.shape)
    x_drop = jnp.where(keep, x_items, 0.0) / (1.0 - corruption_ratio)
    h_u = params["h_user_w"][x_users]
    h_ref = jnp.maximum(x_drop @ params["h_item_w"].T + params["h_item_b"] + h_u, 0.0)
    ref = h_ref @ params["out_w"].T + params["out_b"]

    def check(o, name):
        err = float(jnp.max(jnp.abs(o - ref)))
        scale = float(jnp.max(jnp.abs(ref))) + 1e-6
        assert err / scale < 0.1, f"{name} mismatch: max_abs_err={err}, scale={scale}"

    check(out, "default-tile")

    # Also exercise the streamed multi-block path (megacore split + Buffered(3))
    # by forcing small weight blocks; results must match the same reference.
    prep_small = prepare_params(params, max_block_bytes=32 * 1024)
    out_small = cdae_encoder_forward(x_items, x_users, prep_small, corruption_ratio,
                                     dropout_key=kd, training=True,
                                     max_block_bytes=32 * 1024)
    jax.block_until_ready(out_small)
    assert out_small.shape == (B, item_num)
    check(out_small, "small-tile")

    print("KERNEL_OK")
</pallas_src>

<mosaic_0001>
module attributes {stable_mosaic.version = 11 : i64} {
  func.func @_hidden_kernel(%arg0: i32, %arg1: i32, %arg2: memref<8x1024xbf16, #tpu.memory_space<vmem>>, %arg3: memref<8x1024xi8, #tpu.memory_space<vmem>>, %arg4: memref<1024x128xbf16, #tpu.memory_space<vmem>>, %arg5: memref<1x8x128xf32, #tpu.memory_space<vmem>>) attributes {dimension_semantics = [#tpu.dimension_semantics<parallel>, #tpu.dimension_semantics<arbitrary>], iteration_bounds = array<i64: 1, 1>, scalar_prefetch = 0 : i64, scratch_operands = 0 : i64, tpu.core_type = #tpu.core_type<tc>, window_params = [{transform_indices = @transform_0, window_bounds = array<i64: 8, 1024>}, {transform_indices = @transform_1, window_bounds = array<i64: 8, 1024>}, {transform_indices = @transform_2, window_bounds = array<i64: 1024, 128>}, {transform_indices = @transform_3, window_bounds = array<i64: 1, 8, 128>}]} {
    %c0_i32 = arith.constant 0 : i32
    %0 = arith.cmpi eq, %arg1, %c0_i32 : i32
    %1 = arith.extui %0 : i1 to i32
    %c0_i32_0 = arith.constant 0 : i32
    %2 = arith.cmpi ne, %1, %c0_i32_0 : i32
    scf.if %2 {
      %cst_12 = arith.constant 0.000000e+00 : f32
      %15 = vector.broadcast %cst_12 : f32 to vector<8x128xf32>
      %c0_13 = arith.constant 0 : index
      %c0_14 = arith.constant 0 : index
      %c0_15 = arith.constant 0 : index
      %16 = vector.load %arg5[%c0_13, %c0_14, %c0_15] : memref<1x8x128xf32, #tpu.memory_space<vmem>>, vector<1x8x128xf32>
      %17 = vector.shape_cast %16 : vector<1x8x128xf32> to vector<8x128xf32>
      %18 = vector.shape_cast %15 : vector<8x128xf32> to vector<1x8x128xf32>
      tpu.vector_store %arg5[%c0_13, %c0_14, %c0_15], %18 {strides = array<i32>} : memref<1x8x128xf32, #tpu.memory_space<vmem>>, vector<1x8x128xf32>,
    } else {
    }
    %c0 = arith.constant 0 : index
    %c0_1 = arith.constant 0 : index
    %3 = vector.load %arg2[%c0, %c0_1] : memref<8x1024xbf16, #tpu.memory_space<vmem>>, vector<8x1024xbf16>
    %c0_2 = arith.constant 0 : index
    %c0_3 = arith.constant 0 : index
    %4 = vector.load %arg3[%c0_2, %c0_3] : memref<8x1024xi8, #tpu.memory_space<vmem>>, vector<8x1024xi8>
    %5 = arith.sitofp %4 : vector<8x1024xi8> to vector<8x1024xbf16>
    %6 = arith.mulf %3, %5 : vector<8x1024xbf16>
    %c0_4 = arith.constant 0 : index
    %c0_5 = arith.constant 0 : index
    %c0_6 = arith.constant 0 : index
    %7 = vector.load %arg5[%c0_4, %c0_5, %c0_6] : memref<1x8x128xf32, #tpu.memory_space<vmem>>, vector<1x8x128xf32>
    %8 = vector.shape_cast %7 : vector<1x8x128xf32> to vector<8x128xf32>
    %c0_7 = arith.constant 0 : index
    %c0_8 = arith.constant 0 : index
    %9 = vector.load %arg4[%c0_7, %c0_8] : memref<1024x128xbf16, #tpu.memory_space<vmem>>, vector<1024x128xbf16>
    %cst = arith.constant dense<0.000000e+00> : vector<8x128xf32>
    %10 = tpu.matmul %6, %9, %cst {dimension_numbers = #tpu.dot_dimension_numbers<[1], [0], [0], [1], [0, 0, 1, 1], [], []>} : vector<8x1024xbf16>, vector<1024x128xbf16>, vector<8x128xf32> -> vector<8x128xf32>
    %11 = arith.addf %8, %10 : vector<8x128xf32>
    %c0_9 = arith.constant 0 : index
    %c0_10 = arith.constant 0 : index
    %c0_11 = arith.constant 0 : index
    %12 = vector.load %arg5[%c0_9, %c0_10, %c0_11] : memref<1x8x128xf32, #tpu.memory_space<vmem>>, vector<1x8x128xf32>
    %13 = vector.shape_cast %12 : vector<1x8x128xf32> to vector<8x128xf32>
    %14 = vector.shape_cast %11 : vector<8x128xf32> to vector<1x8x128xf32>
    tpu.vector_store %arg5[%c0_9, %c0_10, %c0_11], %14 {strides = array<i32>} : memref<1x8x128xf32, #tpu.memory_space<vmem>>, vector<1x8x128xf32>,
    return
  }
  func.func @transform_0(%arg0: i32, %arg1: i32) -> (i32, i32) {
    %c1_i32 = arith.constant 1 : i32
    %0 = arith.muli %arg0, %c1_i32 : i32
    %1 = arith.addi %0, %arg1 : i32
    %c0_i32 = arith.constant 0 : i32
    %c0_i32_0 = arith.constant 0 : i32
    return %c0_i32, %1 : i32, i32
  }
  func.func @transform_1(%arg0: i32, %arg1: i32) -> (i32, i32) {
    %c1_i32 = arith.constant 1 : i32
    %0 = arith.muli %arg0, %c1_i32 : i32
    %1 = arith.addi %0, %arg1 : i32
    %c0_i32 = arith.constant 0 : i32
    %c0_i32_0 = arith.constant 0 : i32
    return %c0_i32, %1 : i32, i32
  }
  func.func @transform_2(%arg0: i32, %arg1: i32) -> (i32, i32) {
    %c1_i32 = arith.constant 1 : i32
    %0 = arith.muli %arg0, %c1_i32 : i32
    %1 = arith.addi %0, %arg1 : i32
    %c0_i32 = arith.constant 0 : i32
    %c0_i32_0 = arith.constant 0 : i32
    return %1, %c0_i32 : i32, i32
  }
  func.func @transform_3(%arg0: i32, %arg1: i32) -> (i32, i32, i32) {
    %c0_i32 = arith.constant 0 : i32
    %c0_i32_0 = arith.constant 0 : i32
    %c0_i32_1 = arith.constant 0 : i32
    return %arg0, %c0_i32, %c0_i32_0 : i32, i32, i32
  }
}

</mosaic_0001>

<bundles_post_ra>
// kernel: tpu_custom_call.1
= control target key start
LH: loop header
LB: loop body
LE: loop exit
PB: predicated region body
PF: predicated region fallthrough
CT: control target
= control target key end

     0   :  { %8 = vsyncpa [#allocation3], 0  ;;  %s1208_s0 = inlined_call_operand.hbm [shape: bf16[8,1024], index: 0, kind: input, shape index: {}]   ;;  %s1209_s1 = inlined_call_operand.hbm [shape: s8[8,1024], index: 1, kind: input, shape index: {}]   ;;  %s1210_s2 = inlined_call_operand.hbm [shape: bf16[1024,128], index: 2, kind: input, shape index: {}]   ;;  %s1211_s3 = inlined_call_operand.hbm [shape: f32[1,8,128], index: 3, kind: output, shape index: {}]  }
   0x1   :  { %9 = vsyncpa [#allocation6], 0 }
   0x2   :  { %10 = vsyncpa [#allocation4], 0  ;;  %s1134_s12 = smov [#allocation5]   ;;  %s1135_s14 = smov [#allocation2]  }
   0x3   :  { %s35_s13 = sshll.u32 %s1134_s12, 4  ;;  %s21_s15 = sshll.u32 %s1135_s14, 4  ;;  %s36_s13 = int_to_ptr.vmem [resolvable:$true] %s35_s13  ;;  %s22_s15 = int_to_ptr.vmem [resolvable:$true] %s21_s15 }
   0x4   :  { %s1040_s18 = scalar_lea.hbm %s1209_s1, 256 }
   0x5   :  { %p1041_p0 = scmp.ne.s32.totalorder %s1209_s1, %s1040_s18  ;;  %p1044_p1 = scmp.lt.u32.totalorder %s1040_s18, %s1209_s1 }
   0x7   :  { %p1046_p2 = pnand %p1044_p1, %p1041_p0 }
   0x9   :  { %1049 = shalt.err (!%p1046_p2)
}
   0xa   :  { %s1050_s23 = scalar_lea.vmem %s36_s13, 256  ;;  %p1055_p4 = scmp.lt.s32.totalorder %s36_s13, %s36_s13 }
   0xb   :  { %p1051_p3 = scmp.ne.s32.totalorder %s36_s13, %s1050_s23  ;;  %p1056_p5 = scmp.lt.s32.totalorder %s1050_s23, %s1050_s23 }
   0xd   :  { %p1057_p6 = por %p1056_p5, %p1055_p4 }
   0xf   :  { %p1058_p7 = pnand %p1057_p6, %p1051_p3 }
  0x11   :  { %1061 = shalt.err (!%p1058_p7)
}
  0x12   :  { %38 = dma.hbm_to_vmem [thread:$0]  %s1209_s1, 256, %s36_s13, [#allocation6]  }
  0x13   :  { %s1062_s28 = scalar_lea.hbm %s1208_s0, 512 }
  0x14   :  { %p1063_p8 = scmp.ne.s32.totalorder %s1208_s0, %s1062_s28  ;;  %p1066_p9 = scmp.lt.u32.totalorder %s1062_s28, %s1208_s0 }
  0x16   :  { %p1068_p10 = pnand %p1066_p9, %p1063_p8 }
  0x18   :  { %1071 = shalt.err (!%p1068_p10)
}
  0x19   :  { %s1072_s6 = scalar_lea.vmem %s22_s15, 512  ;;  %p1077_p12 = scmp.lt.s32.totalorder %s22_s15, %s22_s15 }
  0x1a   :  { %p1073_p11 = scmp.ne.s32.totalorder %s22_s15, %s1072_s6  ;;  %p1078_p13 = scmp.lt.s32.totalorder %s1072_s6, %s1072_s6 }
  0x1c   :  { %p1079_p0 = por %p1078_p13, %p1077_p12 }
  0x1e   :  { %p1080_p1 = pnand %p1079_p0, %p1073_p11 }
  0x20   :  { %1083 = shalt.err (!%p1080_p1)
}
  0x21   :  { %24 = dma.hbm_to_vmem [thread:$0]  %s1208_s0, 512, %s22_s15, [#allocation3]  }
  0x22   :  { %s1136_s8 = smov [#allocation7]   ;;  %s1084_s12 = scalar_lea.hbm %s1210_s2, 8192 }
  0x23   :  { %s48_s9 = sshll.u32 %s1136_s8, 4  ;;  %p1085_p2 = scmp.ne.s32.totalorder %s1210_s2, %s1084_s12  ;;  %s49_s9 = int_to_ptr.vmem [resolvable:$true] %s48_s9 }
  0x24   :  { %p1088_p3 = scmp.lt.u32.totalorder %s1084_s12, %s1210_s2 }
  0x26   :  { %p1090_p4 = pnand %p1088_p3, %p1085_p2 }
  0x28   :  { %1093 = shalt.err (!%p1090_p4)
}
  0x29   :  { %s1094_s18 = scalar_lea.vmem %s49_s9, 8192  ;;  %p1099_p6 = scmp.lt.s32.totalorder %s49_s9, %s49_s9 }
  0x2a   :  { %p1095_p5 = scmp.ne.s32.totalorder %s49_s9, %s1094_s18  ;;  %p1100_p7 = scmp.lt.s32.totalorder %s1094_s18, %s1094_s18 }
  0x2c   :  { %p1101_p8 = por %p1100_p7, %p1099_p6 }
  0x2e   :  { %p1102_p9 = pnand %p1101_p8, %p1095_p5 }
  0x30   :  { %1105 = shalt.err (!%p1102_p9)
}
  0x31   :  { %s1137_s0 = smov 64   ;;  %s1138_s15 = smov 4  }
  0x32   :  { %54 = dma.hbm_to_vmem [thread:$0]  %s1210_s2, 8192, %s49_s9, [#allocation6], %s1137_s0, %s1137_s0, %s1138_s15  }
  0x33   :  { %1128 = dma.done.wait [#allocation3], 512  }
  0x34   :  { %1129 = vsyncadd [#allocation3], 4294966784 }
  0x35   :  { %1130 = dma.done.wait [#allocation6], 8448  }
  0x36   :  { %1131 = vsyncadd [#allocation6], 4294958848  ;;  %v976_v0 = vld [vmem:[#allocation7 + $0x40] sm:$0xff]   ;;  %v980_v4 = vld [vmem:[#allocation7 + $0x48] sm:$0xff]   ;;  %s1139_s2 = smov [#allocation8]  }
  0x37   :  { %v977_v1 = vld [vmem:[#allocation7 + $0xc0] sm:$0xff]   ;;  %881 = vmatprep.subr.bf16.mxu0 %v976_v0  ;;  %v981_v5 = vld [vmem:[#allocation7 + $0xc8] sm:$0xff]   ;;  %v984_v8 = vld [vmem:[#allocation7 + $0x50] sm:$0xff]   ;;  %s799_s21 = sshll.u32 %s1139_s2, 4  ;;  %s800_s21 = int_to_ptr.vmem [resolvable:$true] %s799_s21 }
  0x38   :  { %v978_v2 = vld [vmem:[#allocation7] sm:$0xff]   ;;  %903 = vmatprep.subr.bf16.mxu1 %v977_v1  ;;  %v982_v6 = vld [vmem:[#allocation7 + $0x8] sm:$0xff]   ;;  %v985_v9 = vld [vmem:[#allocation7 + $0xd0] sm:$0xff]   ;;  %s1106_s22 = scalar_lea.vmem %s800_s21, 128  ;;  %p1111_p11 = scmp.lt.s32.totalorder %s800_s21, %s800_s21 }
  0x39   :  { %v979_v3 = vld [vmem:[#allocation7 + $0x80] sm:$0xff]   ;;  %882 = vmatpush3.bf16.msra.mxu0 %v978_v2  ;;  %v983_v7 = vld [vmem:[#allocation7 + $0x88] sm:$0xff]   ;;  %v986_v10 = vld [vmem:[#allocation7 + $0x10] sm:$0xff]   ;;  %p1107_p10 = scmp.ne.s32.totalorder %s800_s21, %s1106_s22  ;;  %p1112_p12 = scmp.lt.s32.totalorder %s1106_s22, %s1106_s22 }
  0x3a   :  { %904 = vmatpush3.bf16.msra.mxu1 %v979_v3  ;;  %883 = vmatprep.subr.bf16.mxu0 %v980_v4  ;;  %v987_v11 = vld [vmem:[#allocation7 + $0x90] sm:$0xff]   ;;  %v988_v12 = vld [vmem:[#allocation7 + $0x58] sm:$0xff]   ;;  %v992_v16 = vld [vmem:[#allocation7 + $0x60] sm:$0xff]  }
  0x3b   :  { %905 = vmatprep.subr.bf16.mxu1 %v981_v5  ;;  %v989_v13 = vld [vmem:[#allocation7 + $0xd8] sm:$0xff]   ;;  %v993_v17 = vld [vmem:[#allocation7 + $0xe0] sm:$0xff]   ;;  %v996_v20 = vld [vmem:[#allocation7 + $0x68] sm:$0xff]   ;;  %p1113_p13 = por %p1112_p12, %p1111_p11 }
  0x3c   :  { %v990_v14 = vld [vmem:[#allocation7 + $0x18] sm:$0xff]   ;;  %v994_v18 = vld [vmem:[#allocation7 + $0x20] sm:$0xff]   ;;  %v997_v21 = vld [vmem:[#allocation7 + $0xe8] sm:$0xff]  }
  0x3d   :  { %884 = vmatpush3.bf16.msra.mxu0 %v982_v6  ;;  %v991_v15 = vld [vmem:[#allocation7 + $0x98] sm:$0xff]   ;;  %v995_v19 = vld [vmem:[#allocation7 + $0xa0] sm:$0xff]   ;;  %v998_v22 = vld [vmem:[#allocation7 + $0x28] sm:$0xff]   ;;  %p1114_p0 = pnand %p1113_p13, %p1107_p10 }
  0x3e   :  { %906 = vmatpush3.bf16.msra.mxu1 %v983_v7  ;;  %885 = vmatprep.subr.bf16.mxu0 %v984_v8  ;;  %v999_v23 = vld [vmem:[#allocation7 + $0xa8] sm:$0xff]   ;;  %v1000_v24 = vld [vmem:[#allocation7 + $0x70] sm:$0xff]   ;;  %v1004_v28 = vld [vmem:[#allocation7 + $0x78] sm:$0xff]  }
  0x3f   :  { %907 = vmatprep.subr.bf16.mxu1 %v985_v9  ;;  %v1001_v25 = vld [vmem:[#allocation7 + $0xf0] sm:$0xff]   ;;  %v1005_v29 = vld [vmem:[#allocation7 + $0xf8] sm:$0xff]   ;;  %v1008_v37 = vld [vmem:[#allocation7 + $0x140] sm:$0xff]  }
  0x40   :  { %v1002_v26 = vld [vmem:[#allocation7 + $0x30] sm:$0xff]   ;;  %v1006_v30 = vld [vmem:[#allocation7 + $0x38] sm:$0xff]   ;;  %v1009_v38 = vld [vmem:[#allocation7 + $0x1c0] sm:$0xff]  }
  0x41   :  { %886 = vmatpush3.bf16.msra.mxu0 %v986_v10  ;;  %v1003_v27 = vld [vmem:[#allocation7 + $0xb0] sm:$0xff]   ;;  %v1007_v31 = vld [vmem:[#allocation7 + $0xb8] sm:$0xff]   ;;  %v1010_v41 = vld [vmem:[#allocation7 + $0x100] sm:$0xff]  }
  0x42   :  { %908 = vmatpush3.bf16.msra.mxu1 %v987_v11  ;;  %887 = vmatprep.subr.bf16.mxu0 %v988_v12  ;;  %v76_v32 = vld [vmem:[#allocation2] sm:$0xff]  ;;  %v77_v34 = vld [vmem:[#allocation2 + $0x8] sm:$0xff]  ;;  %v1011_v42 = vld [vmem:[#allocation7 + $0x180] sm:$0xff]  }
  0x43   :  { %909 = vmatprep.subr.bf16.mxu1 %v989_v13  ;;  %v80_v33 = vld [vmem:[#allocation5] sm:$0xff]  ;;  %v1012_v47 = vld [vmem:[#allocation7 + $0x148] sm:$0xff]   ;;  %v1020_v55 = vld [vmem:[#allocation7 + $0x158] sm:$0xff]  }
  0x44   :  { %v82_v35 = vunpack.c.l.s8.bf16 %v80_v33  ;;  %v83_v36 = vunpack.c.h.s8.bf16 %v80_v33  ;;  %v1013_v48 = vld [vmem:[#allocation7 + $0x1c8] sm:$0xff]   ;;  %v1016_v51 = vld [vmem:[#allocation7 + $0x150] sm:$0xff]   ;;  %v1021_v56 = vld [vmem:[#allocation7 + $0x1d8] sm:$0xff]  }
  0x45   :  { %888 = vmatpush3.bf16.msra.mxu0 %v990_v14  ;;  %v1014_v49 = vld [vmem:[#allocation7 + $0x108] sm:$0xff]   ;;  %v1017_v52 = vld [vmem:[#allocation7 + $0x1d0] sm:$0xff]   ;;  %v1022_v57 = vld [vmem:[#allocation7 + $0x118] sm:$0xff]  }
  0x46   :  { %910 = vmatpush3.bf16.msra.mxu1 %v991_v15  ;;  %889 = vmatprep.subr.bf16.mxu0 %v992_v16  ;;  %v86_v39 = vmul.bf16 %v82_v35, %v76_v32  ;;  %v87_v40 = vmul.bf16 %v83_v36, %v77_v34  ;;  %v1015_v50 = vld [vmem:[#allocation7 + $0x188] sm:$0xff]   ;;  %v1018_v53 = vld [vmem:[#allocation7 + $0x110] sm:$0xff]   ;;  %v1023_v58 = vld [vmem:[#allocation7 + $0x198] sm:$0xff]  }
  0x47   :  { %911 = vmatprep.subr.bf16.mxu1 %v993_v17  ;;  %v1019_v54 = vld [vmem:[#allocation7 + $0x190] sm:$0xff]   ;;  %v1024_v59 = vld [vmem:[#allocation7 + $0x160] sm:$0xff]   ;;  %v1028_v63 = vld [vmem:[#allocation7 + $0x168] sm:$0xff]  }
  0x48   :  { %v810_v43 = vcombine.high %v86_v39, %v86_v39  ;;  %v812_v44 = vcombine.high %v87_v40, %v87_v40  ;;  %v809_v45 = vcombine.low %v86_v39, %v86_v39  ;;  %v811_v46 = vcombine.low %v87_v40, %v87_v40  ;;  %v1025_v60 = vld [vmem:[#allocation7 + $0x1e0] sm:$0xff]   ;;  %v1029_v0 = vld [vmem:[#allocation7 + $0x1e8] sm:$0xff]   ;;  %v1032_v3 = vld [vmem:[#allocation7 + $0x170] sm:$0xff]  }
  0x49   :  { %890 = vmatpush3.bf16.msra.mxu0 %v994_v18  ;;  %v1026_v61 = vld [vmem:[#allocation7 + $0x120] sm:$0xff]   ;;  %v1030_v1 = vld [vmem:[#allocation7 + $0x128] sm:$0xff]   ;;  %v1033_v4 = vld [vmem:[#allocation7 + $0x1f0] sm:$0xff]  }
  0x4a   :  { %912 = vmatpush3.bf16.msra.mxu1 %v995_v19  ;;  %891 = vmatprep.subr.bf16.mxu0 %v996_v20  ;;  %v1027_v62 = vld [vmem:[#allocation7 + $0x1a0] sm:$0xff]   ;;  %v1031_v2 = vld [vmem:[#allocation7 + $0x1a8] sm:$0xff]   ;;  %v1034_v5 = vld [vmem:[#allocation7 + $0x130] sm:$0xff]  }
  0x4b   :  { %913 = vmatprep.subr.bf16.mxu1 %v997_v21  ;;  %663 = vmatprep.mubr.bf16.mxu0 %v810_v43  ;;  %v1035_v6 = vld [vmem:[#allocation7 + $0x1b0] sm:$0xff]   ;;  %v1036_v7 = vld [vmem:[#allocation7 + $0x178] sm:$0xff]   ;;  %v78_v11 = vld [vmem:[#allocation2 + $0x10] sm:$0xff] }
  0x4c   :  { %703 = vmatprep.mubr.bf16.mxu1 %v812_v44  ;;  %v1037_v8 = vld [vmem:[#allocation7 + $0x1f8] sm:$0xff]   ;;  %v79_v13 = vld [vmem:[#allocation2 + $0x18] sm:$0xff] }
  0x4d   :  { %892 = vmatpush3.bf16.msra.mxu0 %v998_v22  ;;  %v1038_v9 = vld [vmem:[#allocation7 + $0x138] sm:$0xff]  }
  0x4e   :  { %914 = vmatpush3.bf16.msra.mxu1 %v999_v23  ;;  %893 = vmatprep.subr.bf16.mxu0 %v1000_v24  ;;  %v1039_v10 = vld [vmem:[#allocation7 + $0x1b8] sm:$0xff]  }
  0x4f   :  { %915 = vmatprep.subr.bf16.mxu1 %v1001_v25  ;;  %v81_v12 = vld [vmem:[#allocation5 + $0x8] sm:$0xff] }
  0x50   :  { %v84_v14 = vunpack.c.l.s8.bf16 %v81_v12  ;;  %v85_v15 = vunpack.c.h.s8.bf16 %v81_v12 }
  0x51   :  { %894 = vmatpush3.bf16.msra.mxu0 %v1002_v26 }
  0x52   :  { %916 = vmatpush3.bf16.msra.mxu1 %v1003_v27  ;;  %895 = vmatprep.subr.bf16.mxu0 %v1004_v28  ;;  %v88_v16 = vmul.bf16 %v84_v14, %v78_v11  ;;  %v89_v17 = vmul.bf16 %v85_v15, %v79_v13 }
  0x53   :  { %917 = vmatprep.subr.bf16.mxu1 %v1005_v29 }
  0x54   :  { %v814_v18 = vcombine.high %v88_v16, %v88_v16  ;;  %v816_v19 = vcombine.high %v89_v17, %v89_v17  ;;  %v813_v20 = vcombine.low %v88_v16, %v88_v16  ;;  %v815_v21 = vcombine.low %v89_v17, %v89_v17 }
  0x55   :  { %896 = vmatpush3.bf16.msra.mxu0 %v1006_v30 }
  0x56   :  { %918 = vmatpush3.bf16.msra.mxu1 %v1007_v31  ;;  %925 = vmatprep.subr.bf16.mxu0 %v1008_v37 }
  0x57   :  { %947 = vmatprep.subr.bf16.mxu1 %v1009_v38 }
  0x58   :  { %664 = vmatmul.mubr.bf16.vlgmr.msra.gmra.mrb[0].mxu0 %v809_v45 }
  0x59   :  { %704 = vmatmul.mubr.bf16.vlgmr.msra.gmra.mrb[0].mxu1 %v811_v46  ;;  %926 = vmatpush3.bf16.msra.mxu0 %v1010_v41 }
  0x5a   :  { %948 = vmatpush3.bf16.msra.mxu1 %v1011_v42  ;;  %927 = vmatprep.subr.bf16.mxu0 %v1012_v47 }
  0x5b   :  { %949 = vmatprep.subr.bf16.mxu1 %v1013_v48  ;;  %743 = vmatprep.mubr.bf16.mxu0 %v814_v18 }
  0x5c   :  { %783 = vmatprep.mubr.bf16.mxu1 %v816_v19 }
  0x5d   :  { %928 = vmatpush3.bf16.msra.mxu0 %v1014_v49 }
  0x5e   :  { %950 = vmatpush3.bf16.msra.mxu1 %v1015_v50  ;;  %929 = vmatprep.subr.bf16.mxu0 %v1016_v51 }
  0x5f   :  { %951 = vmatprep.subr.bf16.mxu1 %v1017_v52 }
  0x61   :  { %930 = vmatpush3.bf16.msra.mxu0 %v1018_v53 }
  0x62   :  { %952 = vmatpush3.bf16.msra.mxu1 %v1019_v54  ;;  %931 = vmatprep.subr.bf16.mxu0 %v1020_v55 }
  0x63   :  { %953 = vmatprep.subr.bf16.mxu1 %v1021_v56 }
  0x65   :  { %932 = vmatpush3.bf16.msra.mxu0 %v1022_v57 }
  0x66   :  { %954 = vmatpush3.bf16.msra.mxu1 %v1023_v58  ;;  %933 = vmatprep.subr.bf16.mxu0 %v1024_v59 }
  0x67   :  { %955 = vmatprep.subr.bf16.mxu1 %v1025_v60 }
  0x69   :  { %934 = vmatpush3.bf16.msra.mxu0 %v1026_v61 }
  0x6a   :  { %956 = vmatpush3.bf16.msra.mxu1 %v1027_v62  ;;  %935 = vmatprep.subr.bf16.mxu0 %v1028_v63 }
  0x6b   :  { %957 = vmatprep.subr.bf16.mxu1 %v1029_v0 }
  0x6d   :  { %936 = vmatpush3.bf16.msra.mxu0 %v1030_v1 }
  0x6e   :  { %958 = vmatpush3.bf16.msra.mxu1 %v1031_v2  ;;  %937 = vmatprep.subr.bf16.mxu0 %v1032_v3 }
  0x6f   :  { %959 = vmatprep.subr.bf16.mxu1 %v1033_v4 }
  0x71   :  { %938 = vmatpush3.bf16.msra.mxu0 %v1034_v5 }
  0x72   :  { %960 = vmatpush3.bf16.msra.mxu1 %v1035_v6  ;;  %939 = vmatprep.subr.bf16.mxu0 %v1036_v7 }
  0x73   :  { %961 = vmatprep.subr.bf16.mxu1 %v1037_v8 }
  0x75   :  { %940 = vmatpush3.bf16.msra.mxu0 %v1038_v9 }
  0x76   :  { %962 = vmatpush3.bf16.msra.mxu1 %v1039_v10 }
  0x78   :  { %744 = vmatmul.mubr.bf16.vlgmr.msra.gmra.mrb[4].mxu0 %v813_v20 }
  0x79   :  { %784 = vmatmul.mubr.bf16.vlgmr.msra.gmra.mrb[4].mxu1 %v815_v21 }
 0x12b   :  { %v897_v22 = vpop.f32.mrb[0].mxu0 }
 0x12c   :  { %v919_v23 = vpop.f32.mrb[0].mxu1  ;;  %v898_v24 = vpop.f32.mrb[1].mxu0 }
 0x12d   :  { %v920_v25 = vpop.f32.mrb[1].mxu1  ;;  %v899_v26 = vadd.f32 %v898_v24, %v897_v22  ;;  %v900_v28 = vpop.f32.mrb[2].mxu0 }
 0x12e   :  { %v921_v27 = vadd.f32 %v920_v25, %v919_v23  ;;  %v922_v29 = vpop.f32.mrb[2].mxu1  ;;  %v901_v30 = vpop.f32.mrb[3].mxu0 }
 0x12f   :  { %v923_v31 = vpop.f32.mrb[3].mxu1 }
 0x130   :  { %v706_v32 = vadd.f32 %v921_v27, %v899_v26 }
 0x14b   :  { %v941_v33 = vpop.f32.mrb[4].mxu0 }
 0x14c   :  { %v963_v34 = vpop.f32.mrb[4].mxu1  ;;  %v942_v35 = vpop.f32.mrb[5].mxu0 }
 0x14d   :  { %v964_v36 = vpop.f32.mrb[5].mxu1  ;;  %v943_v37 = vadd.f32 %v942_v35, %v941_v33  ;;  %v944_v39 = vpop.f32.mrb[6].mxu0 }
 0x14e   :  { %v965_v38 = vadd.f32 %v964_v36, %v963_v34  ;;  %v966_v40 = vpop.f32.mrb[6].mxu1  ;;  %v945_v41 = vpop.f32.mrb[7].mxu0 }
 0x14f   :  { %v967_v42 = vpop.f32.mrb[7].mxu1  ;;  %v746_v43 = vadd.f32 %v943_v37, %v706_v32 }
 0x151   :  { %v786_v44 = vadd.f32 %v965_v38, %v746_v43 }
 0x153   :  { %792 = vst [vmem:[#allocation8] sm:$0xff] %v786_v44 }
 0x154   :  { %1117 = shalt.err (!%p1114_p0)
}
 0x155   :  { %s1118_s25 = scalar_lea.hbm %s1211_s3, 128 }
 0x156   :  { %p1119_p1 = scmp.ne.s32.totalorder %s1211_s3, %s1118_s25  ;;  %p1122_p2 = scmp.lt.u32.totalorder %s1118_s25, %s1211_s3 }
 0x158   :  { %p1124_p3 = pnand %p1122_p2, %p1119_p1 }
 0x15a   :  { %1127 = shalt.err (!%p1124_p3)
}
 0x15b   :  { %802 = dma.vmem_to_hbm [thread:$0]  %s800_s21, 128, %s1211_s3, [#allocation4]  }
 0x15c   :  { %1132 = dma.done.wait [#allocation4], 128  }
 0x15d   :  { %1133 = vsyncadd [#allocation4], 4294967168 }
 0x15e   :  { %806 = vsyncpa [#allocation3], 1 }
 0x15f   :  { %807 = vsyncpa [#allocation6], 1 }
 0x160   :  { %808 = vsyncpa [#allocation4], 1 }

</bundles_post_ra>
